<compile_context>
chip_gen: v7x
topology: tpu7x:2x2x1
jax: 0.10.0
libtpu: 0.0.40
codegen_flags: <defaults>
</compile_context>

<pallas_src>
import functools

import jax
import jax.numpy as jnp
import numpy as np
from jax.experimental import pallas as pl
from jax.experimental.pallas import tpu as pltpu


# ----------------------------- Pallas kernel ------------------------------- #

def _fused_forward_kernel(*refs, n_shared):
    """refs = (x, w1, b1, ..., wL, bL, w_heads, out).

    x:        (Mp, Hin*Win*Cin)   flattened, batch padded to a multiple of 8
    w_l:      (K_l, O_l)          conv folded into a dense matmul matrix
    b_l:      (1, O_l)            bias tiled over spatial positions
    w_heads:  (K_h, 128)          [disc | cls] concatenated, lane-padded
    out:      (Mp, 128)
    """
    x_ref, out_ref = refs[0], refs[-1]
    h = x_ref[...]
    for l in range(n_shared):                          # static unroll (3 layers)
        w_ref = refs[1 + 2 * l]
        b_ref = refs[2 + 2 * l]
        h = jnp.dot(h, w_ref[...], preferred_element_type=jnp.float32)
        h = h + b_ref[...]                             # one (1,O) broadcast/layer
        h = jnp.where(h >= 0.0, h, 0.01 * h)           # LeakyReLU(0.01)
    wh_ref = refs[1 + 2 * n_shared]                    # fused [disc | cls] head
    out_ref[...] = jnp.dot(h, wh_ref[...], preferred_element_type=jnp.float32)


def _fused_forward_call(x_pad, mats, biases, heads_w):
    args = [x_pad]
    for m, b in zip(mats, biases):
        args.extend((m, b))
    args.append(heads_w)
    kern = functools.partial(_fused_forward_kernel, n_shared=len(mats))
    return pl.pallas_call(
        kern,
        out_shape=jax.ShapeDtypeStruct(
            (x_pad.shape[0], heads_w.shape[1]), jnp.float32),
        in_specs=[pl.BlockSpec(memory_space=pltpu.MemorySpace.VMEM)] * len(args),
        out_specs=pl.BlockSpec(memory_space=pltpu.MemorySpace.VMEM),
    )(*args)


# ------------------- conv -> dense-matmul folding (init-time) -------------- #

def _conv_as_matrix(w, hin, win, stride, pad):
    """Dense matmul equivalent of a Conv2d acting on NHWC-flat vectors.

    mat[(ih*win+iw)*Cin + ci, (oh*wout+ow)*Cout + co] = w[co, ci, kh, kw]
    with ih = oh*stride + kh - pad, iw = ow*stride + kw - pad; out-of-range
    taps (conv zero-padding) are simply omitted (zero rows).
    """
    w = np.asarray(w, np.float32)                      # (O, I, KH, KW)
    cout, cin, kh_n, kw_n = w.shape
    hout = (hin + 2 * pad - kh_n) // stride + 1
    wout = (win + 2 * pad - kw_n) // stride + 1
    mat = np.zeros((hin * win * cin, hout * wout * cout), np.float32)
    for oh in range(hout):
        for ow in range(wout):
            c0 = (oh * wout + ow) * cout
            for kh in range(kh_n):
                ih = oh * stride + kh - pad
                if not 0 <= ih < hin:
                    continue
                for kw in range(kw_n):
                    iw = ow * stride + kw - pad
                    if not 0 <= iw < win:
                        continue
                    r0 = (ih * win + iw) * cin
                    mat[r0:r0 + cin, c0:c0 + cout] = w[:, :, kh, kw].T
    return mat, hout, wout


def pack_params(params, image_size):
    """Fold every conv into a dense matmul matrix (done once, host-side)."""
    mats, biases = [], []
    hh = ww = image_size
    for wgt, b in params["shared"]:
        m, hh, ww = _conv_as_matrix(wgt, hh, ww, stride=2, pad=1)
        mats.append(jnp.asarray(m))
        biases.append(
            jnp.asarray(np.tile(np.asarray(b, np.float32), hh * ww))[None, :])
    # Both heads read the same `middle` activation -> fuse into one matmul.
    dis_m, dis_h, dis_w = _conv_as_matrix(params["disc_w"], hh, ww, stride=1, pad=1)
    cls_m, cls_h, cls_w = _conv_as_matrix(params["cls_w"], hh, ww, stride=1, pad=0)
    assert (cls_h, cls_w) == (1, 1), "cls head must collapse spatial dims to 1x1"
    heads = np.concatenate([dis_m, cls_m], axis=1)          # (K, dis_h*dis_w+ag)
    heads = np.pad(heads, ((0, 0), (0, (-heads.shape[1]) % 128)))  # lane-dense
    packed = {"mats": tuple(mats), "biases": tuple(biases),
              "heads": jnp.asarray(heads)}
    return packed, (dis_h, dis_w)


# ----------------------------- model definition ---------------------------- #

def init_params(key, df_dim, ag_dim, repeat_num, image_size):
    """Deterministic synthetic weights matching the nn.Module shapes."""
    ks = int(image_size // (2 ** repeat_num))  # kernel_size of the two heads
    params = {"shared": []}
    cin, cout = 1, df_dim
    for _ in range(repeat_num):
        key, kw, kb = jax.random.split(key, 3)
        w = 0.05 * jax.random.normal(kw, (cout, cin, 4, 4), jnp.float32)
        b = 0.05 * jax.random.normal(kb, (cout,), jnp.float32)
        params["shared"].append((w, b))
        cin, cout = cout, cout * 2
    key, k1, k2 = jax.random.split(key, 3)
    params["disc_w"] = 0.05 * jax.random.normal(k1, (1, cin, ks, ks), jnp.float32)
    params["cls_w"] = 0.05 * jax.random.normal(k2, (ag_dim, cin, ks, ks), jnp.float32)
    return params


def make_forward(packed, dis_hw, ag_dim):
    dis_h, dis_w = dis_hw
    arrays = (packed["mats"], packed["biases"], packed["heads"])

    @jax.jit
    def forward(arrays, x):
        mats, biases, heads_w = arrays
        n = x.shape[0]
        x_flat = jnp.transpose(x, (0, 2, 3, 1)).reshape(n, -1)   # NCHW -> NHWC flat
        m_pad = max(8, ((n + 7) // 8) * 8)                       # sublane-align M
        x_pad = jnp.zeros((m_pad, x_flat.shape[1]), jnp.float32).at[:n].set(x_flat)
        out = _fused_forward_call(x_pad, mats, biases, heads_w)  # (m_pad, 128)
        n_dis = dis_h * dis_w
        dis = out[:n, :n_dis].reshape(n, 1, dis_h, dis_w)        # disc has 1 ch
        cls = out[:n, n_dis:n_dis + ag_dim]
        return dis, cls

    return lambda x: forward(arrays, x)


# ----------------------------- pure-JAX reference -------------------------- #

def _ref_conv(x, w, b, stride, pad):
    out = jax.lax.conv_general_dilated(
        x, w, (stride, stride), [(pad, pad), (pad, pad)],
        dimension_numbers=("NCHW", "OIHW", "NCHW"))
    if b is not None:
        out = out + b[None, :, None, None]
    return out


def reference_forward(params, x):
    h = x
    for (w, b) in params["shared"]:
        h = _ref_conv(h, w, b, 2, 1)
        h = jnp.where(h >= 0.0, h, 0.01 * h)
    dis = _ref_conv(h, params["disc_w"], None, 1, 1)
    cls = _ref_conv(h, params["cls_w"], None, 1, 0)
    return dis, cls.reshape(cls.shape[0], cls.shape[1])


# ---------------------------------- main ----------------------------------- #

if __name__ == "__main__":
    # Small config consistent with the module: image_size=16, df_dim=8,
    # ag_dim=11, repeat_num=3  ->  head kernel_size = 16 / 2^3 = 2.
    IMAGE_SIZE, DF_DIM, AG_DIM, REPEAT_NUM, BATCH = 16, 8, 11, 3, 2

    key = jax.random.PRNGKey(0)
    key, kx = jax.random.split(key)
    params = init_params(key, DF_DIM, AG_DIM, REPEAT_NUM, IMAGE_SIZE)
    x = jax.random.normal(kx, (BATCH, 1, IMAGE_SIZE, IMAGE_SIZE), jnp.float32)

    packed, dis_hw = pack_params(params, IMAGE_SIZE)
    forward = make_forward(packed, dis_hw, AG_DIM)

    dis_logit, cls_logit = forward(x)
    jax.block_until_ready((dis_logit, cls_logit))

    # Shape checks (mirror the PyTorch forward semantics).
    assert dis_logit.shape == (BATCH, 1, 3, 3), dis_logit.shape
    assert cls_logit.shape == (BATCH, AG_DIM), cls_logit.shape

    # Numerical check against a plain-JAX conv reference.
    ref_dis, ref_cls = reference_forward(params, x)
    assert jnp.allclose(dis_logit, ref_dis, rtol=5e-2, atol=5e-2), \
        float(jnp.max(jnp.abs(dis_logit - ref_dis)))
    assert jnp.allclose(cls_logit, ref_cls, rtol=5e-2, atol=5e-2), \
        float(jnp.max(jnp.abs(cls_logit - ref_cls)))

    print("KERNEL_OK")
</pallas_src>

<mosaic_0001>
module attributes {stable_mosaic.version = 11 : i64} {
  func.func @_fused_forward_kernel(%arg0: memref<8x256xf32, #tpu.memory_space<vmem>>, %arg1: memref<256x512xf32, #tpu.memory_space<vmem>>, %arg2: memref<1x512xf32, #tpu.memory_space<vmem>>, %arg3: memref<512x256xf32, #tpu.memory_space<vmem>>, %arg4: memref<1x256xf32, #tpu.memory_space<vmem>>, %arg5: memref<256x128xf32, #tpu.memory_space<vmem>>, %arg6: memref<1x128xf32, #tpu.memory_space<vmem>>, %arg7: memref<128x128xf32, #tpu.memory_space<vmem>>, %arg8: memref<8x128xf32, #tpu.memory_space<vmem>>) attributes {dimension_semantics = [], scalar_prefetch = 0 : i64, scratch_operands = 0 : i64, tpu.core_type = #tpu.core_type<tc>} {
    %c0 = arith.constant 0 : index
    %c0_0 = arith.constant 0 : index
    %0 = vector.load %arg0[%c0, %c0_0] : memref<8x256xf32, #tpu.memory_space<vmem>>, vector<8x256xf32>
    %c0_1 = arith.constant 0 : index
    %c0_2 = arith.constant 0 : index
    %1 = vector.load %arg1[%c0_1, %c0_2] : memref<256x512xf32, #tpu.memory_space<vmem>>, vector<256x512xf32>
    %cst = arith.constant dense<0.000000e+00> : vector<8x512xf32>
    %2 = tpu.matmul %0, %1, %cst {dimension_numbers = #tpu.dot_dimension_numbers<[1], [0], [0], [1], [0, 0, 1, 1], [], []>} : vector<8x256xf32>, vector<256x512xf32>, vector<8x512xf32> -> vector<8x512xf32>
    %c0_3 = arith.constant 0 : index
    %c0_4 = arith.constant 0 : index
    %3 = vector.load %arg2[%c0_3, %c0_4] : memref<1x512xf32, #tpu.memory_space<vmem>>, vector<1x512xf32>
    %4 = vector.broadcast %3 : vector<1x512xf32> to vector<8x512xf32>
    %5 = arith.addf %2, %4 : vector<8x512xf32>
    %cst_5 = arith.constant 0.000000e+00 : f32
    %6 = vector.broadcast %cst_5 : f32 to vector<8x512xf32>
    %7 = arith.cmpf oge, %5, %6 : vector<8x512xf32>
    %cst_6 = arith.constant 0.00999999977 : f32
    %8 = vector.broadcast %cst_6 : f32 to vector<8x512xf32>
    %9 = arith.mulf %8, %5 : vector<8x512xf32>
    %10 = arith.select %7, %5, %9 : vector<8x512xi1>, vector<8x512xf32>
    %c0_7 = arith.constant 0 : index
    %c0_8 = arith.constant 0 : index
    %11 = vector.load %arg3[%c0_7, %c0_8] : memref<512x256xf32, #tpu.memory_space<vmem>>, vector<512x256xf32>
    %cst_9 = arith.constant dense<0.000000e+00> : vector<8x256xf32>
    %12 = tpu.matmul %10, %11, %cst_9 {dimension_numbers = #tpu.dot_dimension_numbers<[1], [0], [0], [1], [0, 0, 1, 1], [], []>} : vector<8x512xf32>, vector<512x256xf32>, vector<8x256xf32> -> vector<8x256xf32>
    %c0_10 = arith.constant 0 : index
    %c0_11 = arith.constant 0 : index
    %13 = vector.load %arg4[%c0_10, %c0_11] : memref<1x256xf32, #tpu.memory_space<vmem>>, vector<1x256xf32>
    %14 = vector.broadcast %13 : vector<1x256xf32> to vector<8x256xf32>
    %15 = arith.addf %12, %14 : vector<8x256xf32>
    %cst_12 = arith.constant 0.000000e+00 : f32
    %16 = vector.broadcast %cst_12 : f32 to vector<8x256xf32>
    %17 = arith.cmpf oge, %15, %16 : vector<8x256xf32>
    %cst_13 = arith.constant 0.00999999977 : f32
    %18 = vector.broadcast %cst_13 : f32 to vector<8x256xf32>
    %19 = arith.mulf %18, %15 : vector<8x256xf32>
    %20 = arith.select %17, %15, %19 : vector<8x256xi1>, vector<8x256xf32>
    %c0_14 = arith.constant 0 : index
    %c0_15 = arith.constant 0 : index
    %21 = vector.load %arg5[%c0_14, %c0_15] : memref<256x128xf32, #tpu.memory_space<vmem>>, vector<256x128xf32>
    %cst_16 = arith.constant dense<0.000000e+00> : vector<8x128xf32>
    %22 = tpu.matmul %20, %21, %cst_16 {dimension_numbers = #tpu.dot_dimension_numbers<[1], [0], [0], [1], [0, 0, 1, 1], [], []>} : vector<8x256xf32>, vector<256x128xf32>, vector<8x128xf32> -> vector<8x128xf32>
    %c0_17 = arith.constant 0 : index
    %c0_18 = arith.constant 0 : index
    %23 = vector.load %arg6[%c0_17, %c0_18] : memref<1x128xf32, #tpu.memory_space<vmem>>, vector<1x128xf32>
    %24 = vector.broadcast %23 : vector<1x128xf32> to vector<8x128xf32>
    %25 = arith.addf %22, %24 : vector<8x128xf32>
    %cst_19 = arith.constant 0.000000e+00 : f32
    %26 = vector.broadcast %cst_19 : f32 to vector<8x128xf32>
    %27 = arith.cmpf oge, %25, %26 : vector<8x128xf32>
    %cst_20 = arith.constant 0.00999999977 : f32
    %28 = vector.broadcast %cst_20 : f32 to vector<8x128xf32>
    %29 = arith.mulf %28, %25 : vector<8x128xf32>
    %30 = arith.select %27, %25, %29 : vector<8x128xi1>, vector<8x128xf32>
    %c0_21 = arith.constant 0 : index
    %c0_22 = arith.constant 0 : index
    %31 = vector.load %arg7[%c0_21, %c0_22] : memref<128x128xf32, #tpu.memory_space<vmem>>, vector<128x128xf32>
    %cst_23 = arith.constant dense<0.000000e+00> : vector<8x128xf32>
    %32 = tpu.matmul %30, %31, %cst_23 {dimension_numbers = #tpu.dot_dimension_numbers<[1], [0], [0], [1], [0, 0, 1, 1], [], []>} : vector<8x128xf32>, vector<128x128xf32>, vector<8x128xf32> -> vector<8x128xf32>
    %c0_24 = arith.constant 0 : index
    %c0_25 = arith.constant 0 : index
    %33 = vector.load %arg8[%c0_24, %c0_25] : memref<8x128xf32, #tpu.memory_space<vmem>>, vector<8x128xf32>
    tpu.vector_store %arg8[%c0_24, %c0_25], %32 {strides = array<i32>} : memref<8x128xf32, #tpu.memory_space<vmem>>, vector<8x128xf32>,
    return
  }
}

</mosaic_0001>

<bundles_post_ra>
// kernel: forward.1
= control target key start
LH: loop header
LB: loop body
LE: loop exit
PB: predicated region body
PF: predicated region fallthrough
CT: control target
= control target key end

     0   :  { %13 = vsyncpa [#allocation3], 0  ;;  %s1546_s0 = inlined_call_operand.vmem [shape: f32[8,256], index: 0, kind: input, shape index: {}]   ;;  %s1547_s1 = inlined_call_operand.hbm [shape: f32[256,512], index: 1, kind: input, shape index: {}]   ;;  %s1548_s2 = inlined_call_operand.vmem [shape: f32[1,512], index: 2, kind: input, shape index: {}]   ;;  %s1549_s3 = inlined_call_operand.hbm [shape: f32[512,256], index: 3, kind: input, shape index: {}]   ;;  %s1550_s4 = inlined_call_operand.vmem [shape: f32[1,256], index: 4, kind: input, shape index: {}]   ;;  %s1551_s5 = inlined_call_operand.hbm [shape: f32[256,128], index: 5, kind: input, shape index: {}]   ;;  %s1552_s6 = inlined_call_operand.vmem [shape: f32[1,128], index: 6, kind: input, shape index: {}]   ;;  %s1553_s7 = inlined_call_operand.hbm [shape: f32[128,128], index: 7, kind: input, shape index: {}]   ;;  %s1554_s8 = inlined_call_operand.vmem [shape: f32[8,128], index: 8, kind: output, shape index: {}]  }
   0x1   :  { %14 = vsyncpa [#allocation5], 0 }
   0x2   :  { %15 = vsyncpa [#allocation8], 0  ;;  %s1395_s27 = smov [#allocation4]   ;;  %s1301_s9 = scalar_lea.hbm %s1549_s3, 16384 }
   0x3   :  { %s37_s28 = sshll.u32 %s1395_s27, 4  ;;  %p1302_p0 = scmp.ne.s32.totalorder %s1549_s3, %s1301_s9  ;;  %s38_s28 = int_to_ptr.vmem [resolvable:$true] %s37_s28 }
   0x4   :  { %p1305_p1 = scmp.lt.u32.totalorder %s1301_s9, %s1549_s3 }
   0x6   :  { %p1307_p2 = pnand %p1305_p1, %p1302_p0 }
   0x8   :  { %1310 = shalt.err (!%p1307_p2)
}
   0x9   :  { %s1311_s14 = scalar_lea.vmem %s38_s28, 16384  ;;  %p1316_p4 = scmp.lt.s32.totalorder %s38_s28, %s38_s28 }
   0xa   :  { %p1312_p3 = scmp.ne.s32.totalorder %s38_s28, %s1311_s14  ;;  %p1317_p5 = scmp.lt.s32.totalorder %s1311_s14, %s1311_s14 }
   0xc   :  { %p1318_p6 = por %p1317_p5, %p1316_p4 }
   0xe   :  { %p1319_p7 = pnand %p1318_p6, %p1312_p3 }
  0x10   :  { %1322 = shalt.err (!%p1319_p7)
}
  0x11   :  { %s1396_s15 = smov 256   ;;  %s1397_s16 = smov 16  }
  0x12   :  { %43 = dma.hbm_to_vmem [thread:$0]  %s1549_s3, 16384, %s38_s28, [#allocation5], %s1396_s15, %s1396_s15, %s1397_s16  }
  0x13   :  { %s1398_s19 = smov [#allocation2]   ;;  %s1323_s23 = scalar_lea.hbm %s1547_s1, 16384 }
  0x14   :  { %s23_s20 = sshll.u32 %s1398_s19, 4  ;;  %p1324_p8 = scmp.ne.s32.totalorder %s1547_s1, %s1323_s23  ;;  %s24_s20 = int_to_ptr.vmem [resolvable:$true] %s23_s20 }
  0x15   :  { %p1327_p9 = scmp.lt.u32.totalorder %s1323_s23, %s1547_s1 }
  0x17   :  { %p1329_p10 = pnand %p1327_p9, %p1324_p8 }
  0x19   :  { %1332 = shalt.err (!%p1329_p10)
}
  0x1a   :  { %s1333_s29 = scalar_lea.vmem %s24_s20, 16384  ;;  %p1338_p12 = scmp.lt.s32.totalorder %s24_s20, %s24_s20 }
  0x1b   :  { %p1334_p11 = scmp.ne.s32.totalorder %s24_s20, %s1333_s29  ;;  %p1339_p13 = scmp.lt.s32.totalorder %s1333_s29, %s1333_s29 }
  0x1d   :  { %p1340_p0 = por %p1339_p13, %p1338_p12 }
  0x1f   :  { %p1341_p1 = pnand %p1340_p0, %p1334_p11 }
  0x21   :  { %1344 = shalt.err (!%p1341_p1)
}
  0x22   :  { %s1399_s3 = smov 512   ;;  %s1400_s28 = smov 32  }
  0x23   :  { %29 = dma.hbm_to_vmem [thread:$0]  %s1547_s1, 16384, %s24_s20, [#allocation3], %s1399_s3, %s1399_s3, %s1400_s28  }
  0x24   :  { %s1401_s10 = smov [#allocation6]   ;;  %s1345_s14 = scalar_lea.hbm %s1551_s5, 4096 }
  0x25   :  { %s51_s11 = sshll.u32 %s1401_s10, 4  ;;  %p1346_p2 = scmp.ne.s32.totalorder %s1551_s5, %s1345_s14  ;;  %s52_s11 = int_to_ptr.vmem [resolvable:$true] %s51_s11 }
  0x26   :  { %p1349_p3 = scmp.lt.u32.totalorder %s1345_s14, %s1551_s5 }
  0x28   :  { %p1351_p4 = pnand %p1349_p3, %p1346_p2 }
  0x2a   :  { %1354 = shalt.err (!%p1351_p4)
}
  0x2b   :  { %s1355_s19 = scalar_lea.vmem %s52_s11, 4096  ;;  %p1360_p6 = scmp.lt.s32.totalorder %s52_s11, %s52_s11 }
  0x2c   :  { %p1356_p5 = scmp.ne.s32.totalorder %s52_s11, %s1355_s19  ;;  %p1361_p7 = scmp.lt.s32.totalorder %s1355_s19, %s1355_s19 }
  0x2e   :  { %p1362_p8 = por %p1361_p7, %p1360_p6 }
  0x30   :  { %p1363_p9 = pnand %p1362_p8, %p1356_p5 }
  0x32   :  { %1366 = shalt.err (!%p1363_p9)
}
  0x33   :  { %s1402_s1 = smov 128   ;;  %s1403_s20 = smov 8  }
  0x34   :  { %57 = dma.hbm_to_vmem [thread:$0]  %s1551_s5, 4096, %s52_s11, [#allocation5], %s1402_s1, %s1402_s1, %s1403_s20  }
  0x35   :  { %s1404_s23 = smov [#allocation7]   ;;  %s1367_s27 = scalar_lea.hbm %s1553_s7, 2048 }
  0x36   :  { %s65_s24 = sshll.u32 %s1404_s23, 4  ;;  %p1368_p10 = scmp.ne.s32.totalorder %s1553_s7, %s1367_s27  ;;  %s66_s24 = int_to_ptr.vmem [resolvable:$true] %s65_s24 }
  0x37   :  { %p1371_p11 = scmp.lt.u32.totalorder %s1367_s27, %s1553_s7 }
  0x39   :  { %p1373_p12 = pnand %p1371_p11, %p1368_p10 }
  0x3b   :  { %1376 = shalt.err (!%p1373_p12)
}
  0x3c   :  { %s1377_s9 = scalar_lea.vmem %s66_s24, 2048  ;;  %p1382_p0 = scmp.lt.s32.totalorder %s66_s24, %s66_s24 }
  0x3d   :  { %p1378_p13 = scmp.ne.s32.totalorder %s66_s24, %s1377_s9  ;;  %p1383_p1 = scmp.lt.s32.totalorder %s1377_s9, %s1377_s9 }
  0x3f   :  { %p1384_p2 = por %p1383_p1, %p1382_p0 }
  0x41   :  { %p1385_p3 = pnand %p1384_p2, %p1378_p13 }
  0x43   :  { %1388 = shalt.err (!%p1385_p3)
}
  0x44   :  { %71 = dma.hbm_to_vmem [thread:$0]  %s1553_s7, 2048, %s66_s24, [#allocation8], %s1402_s1, %s1402_s1, %s1403_s20  }
  0x45   :  { %1389 = dma.done.wait [#allocation3], 16384  }
  0x46   :  { %1390 = vsyncadd [#allocation3], 4294950912 }
  0x47   :  { %1391 = dma.done.wait [#allocation5], 20480  }
  0x48   :  { %1392 = vsyncadd [#allocation5], 4294946816 }
  0x49   :  { %1393 = dma.done.wait [#allocation8], 2048  }
  0x4a   :  { %1394 = vsyncadd [#allocation8], 4294965248  ;;  %v87_v0 = vld [vmem:[#allocation2 + $0x8] sm:$0xff]  ;;  %v86_v2 = vld [vmem:[#allocation2] sm:$0xff]  ;;  %vm1406_vm6 = vmmov 0  }
  0x4b   :  { %v91_v1 = vld [vmem:[#allocation2 + $0x28] sm:$0xff]  ;;  %v90_v4 = vld [vmem:[#allocation2 + $0x20] sm:$0xff]  ;;  %v89_v40 = vld [vmem:[#allocation2 + $0x18] sm:$0xff] }
  0x4c   :  { %v972_v3 = vpack.c.bf16 %v91_v1, %v87_v0  ;;  %v95_v5 = vld [vmem:[#allocation2 + $0x48] sm:$0xff]  ;;  %v974_v7 = vpack.c.bf16 %v90_v4, %v86_v2  ;;  %v94_v9 = vld [vmem:[#allocation2 + $0x40] sm:$0xff]  ;;  %v93_v44 = vld [vmem:[#allocation2 + $0x38] sm:$0xff] }
  0x4d   :  { %v99_v6 = vld [vmem:[#allocation2 + $0x68] sm:$0xff]  ;;  %v98_v10 = vld [vmem:[#allocation2 + $0x60] sm:$0xff]  ;;  %v1036_v45 = vpack.c.bf16 %v93_v44, %v89_v40  ;;  %v88_v46 = vld [vmem:[#allocation2 + $0x10] sm:$0xff] }
  0x4e   :  { %v976_v8 = vpack.c.bf16 %v99_v6, %v95_v5  ;;  %v103_v11 = vld [vmem:[#allocation2 + $0x88] sm:$0xff]  ;;  %973 = vmatprep.subr.bf16.mxu0 %v972_v3  ;;  %v978_v13 = vpack.c.bf16 %v98_v10, %v94_v9  ;;  %v102_v15 = vld [vmem:[#allocation2 + $0x80] sm:$0xff]  ;;  %v92_v47 = vld [vmem:[#allocation2 + $0x30] sm:$0xff] }
  0x4f   :  { %v107_v12 = vld [vmem:[#allocation2 + $0xa8] sm:$0xff]  ;;  %975 = vmatpush1.bf16.msra.mxu0 %v974_v7  ;;  %v106_v16 = vld [vmem:[#allocation2 + $0xa0] sm:$0xff]  ;;  %v1038_v50 = vpack.c.bf16 %v92_v47, %v88_v46  ;;  %v97_v51 = vld [vmem:[#allocation2 + $0x58] sm:$0xff]  ;;  %1037 = vmatprep.subr.bf16.mxu1 %v1036_v45 }
  0x50   :  { %977 = vmatprep.subr.bf16.mxu0 %v976_v8  ;;  %v980_v14 = vpack.c.bf16 %v107_v12, %v103_v11  ;;  %v111_v17 = vld [vmem:[#allocation2 + $0xc8] sm:$0xff]  ;;  %v982_v19 = vpack.c.bf16 %v106_v16, %v102_v15  ;;  %v110_v21 = vld [vmem:[#allocation2 + $0xc0] sm:$0xff]  ;;  %v101_v52 = vld [vmem:[#allocation2 + $0x78] sm:$0xff] }
  0x51   :  { %v115_v18 = vld [vmem:[#allocation2 + $0xe8] sm:$0xff]  ;;  %v114_v22 = vld [vmem:[#allocation2 + $0xe0] sm:$0xff]  ;;  %v1040_v54 = vpack.c.bf16 %v101_v52, %v97_v51  ;;  %v96_v55 = vld [vmem:[#allocation2 + $0x50] sm:$0xff]  ;;  %1039 = vmatpush1.bf16.msra.mxu1 %v1038_v50 }
  0x52   :  { %v984_v20 = vpack.c.bf16 %v115_v18, %v111_v17  ;;  %v119_v23 = vld [vmem:[#allocation2 + $0x108] sm:$0xff]  ;;  %v986_v25 = vpack.c.bf16 %v114_v22, %v110_v21  ;;  %v118_v27 = vld [vmem:[#allocation2 + $0x100] sm:$0xff]  ;;  %v100_v56 = vld [vmem:[#allocation2 + $0x70] sm:$0xff] }
  0x53   :  { %979 = vmatpush1.bf16.msra.mxu0 %v978_v13  ;;  %v123_v24 = vld [vmem:[#allocation2 + $0x128] sm:$0xff]  ;;  %v122_v28 = vld [vmem:[#allocation2 + $0x120] sm:$0xff]  ;;  %v105_v57 = vld [vmem:[#allocation2 + $0x98] sm:$0xff]  ;;  %v1042_v61 = vpack.c.bf16 %v100_v56, %v96_v55  ;;  %1041 = vmatprep.subr.bf16.mxu1 %v1040_v54 }
  0x54   :  { %981 = vmatprep.subr.bf16.mxu0 %v980_v14  ;;  %v988_v26 = vpack.c.bf16 %v123_v24, %v119_v23  ;;  %v127_v29 = vld [vmem:[#allocation2 + $0x148] sm:$0xff]  ;;  %v990_v31 = vpack.c.bf16 %v122_v28, %v118_v27  ;;  %v126_v33 = vld [vmem:[#allocation2 + $0x140] sm:$0xff]  ;;  %v109_v62 = vld [vmem:[#allocation2 + $0xb8] sm:$0xff] }
  0x55   :  { %v131_v30 = vld [vmem:[#allocation2 + $0x168] sm:$0xff]  ;;  %v130_v34 = vld [vmem:[#allocation2 + $0x160] sm:$0xff]  ;;  %v1044_v0 = vpack.c.bf16 %v109_v62, %v105_v57  ;;  %v104_v1 = vld [vmem:[#allocation2 + $0x90] sm:$0xff]  ;;  %1043 = vmatpush1.bf16.msra.mxu1 %v1042_v61 }
  0x56   :  { %v992_v32 = vpack.c.bf16 %v131_v30, %v127_v29  ;;  %v135_v35 = vld [vmem:[#allocation2 + $0x188] sm:$0xff]  ;;  %v994_v37 = vpack.c.bf16 %v130_v34, %v126_v33  ;;  %v134_v38 = vld [vmem:[#allocation2 + $0x180] sm:$0xff]  ;;  %v108_v2 = vld [vmem:[#allocation2 + $0xb0] sm:$0xff] }
  0x57   :  { %983 = vmatpush1.bf16.msra.mxu0 %v982_v19  ;;  %v139_v36 = vld [vmem:[#allocation2 + $0x1a8] sm:$0xff]  ;;  %v138_v39 = vld [vmem:[#allocation2 + $0x1a0] sm:$0xff]  ;;  %v113_v3 = vld [vmem:[#allocation2 + $0xd8] sm:$0xff]  ;;  %v1046_v10 = vpack.c.bf16 %v108_v2, %v104_v1  ;;  %1045 = vmatprep.subr.bf16.mxu1 %v1044_v0 }
  0x58   :  { %985 = vmatprep.subr.bf16.mxu0 %v984_v20  ;;  %v996_v41 = vpack.c.bf16 %v139_v36, %v135_v35  ;;  %v143_v42 = vld [vmem:[#allocation2 + $0x1c8] sm:$0xff]  ;;  %v142_v49 = vld [vmem:[#allocation2 + $0x1c0] sm:$0xff]  ;;  %v998_v53 = vpack.c.bf16 %v138_v39, %v134_v38  ;;  %v117_v4 = vld [vmem:[#allocation2 + $0xf8] sm:$0xff] }
  0x59   :  { %v147_v43 = vld [vmem:[#allocation2 + $0x1e8] sm:$0xff]  ;;  %v146_v59 = vld [vmem:[#allocation2 + $0x1e0] sm:$0xff]  ;;  %v1048_v12 = vpack.c.bf16 %v117_v4, %v113_v3  ;;  %v112_v13 = vld [vmem:[#allocation2 + $0xd0] sm:$0xff]  ;;  %1047 = vmatpush1.bf16.msra.mxu1 %v1046_v10 }
  0x5a   :  { %v85_v48 = vld [vmem:[%s1546_s0 + $0x8] sm:$0xff]  ;;  %v1000_v58 = vpack.c.bf16 %v147_v43, %v143_v42  ;;  %v1002_v5 = vpack.c.bf16 %v146_v59, %v142_v49  ;;  %v150_v7 = vld [vmem:[#allocation2 + $0x200] sm:$0xff]  ;;  %v116_v14 = vld [vmem:[#allocation2 + $0xf0] sm:$0xff] }
  0x5b   :  { %987 = vmatpush1.bf16.msra.mxu0 %v986_v25  ;;  %300 = vmatprep.mubr.f32.mxu0 %v85_v48  ;;  %v151_v60 = vld [vmem:[#allocation2 + $0x208] sm:$0xff]  ;;  %v154_v8 = vld [vmem:[#allocation2 + $0x220] sm:$0xff]  ;;  %v121_v15 = vld [vmem:[#allocation2 + $0x118] sm:$0xff]  ;;  %v1050_v22 = vpack.c.bf16 %v116_v14, %v112_v13 }
  0x5c   :  { %989 = vmatprep.subr.bf16.mxu0 %v988_v26  ;;  %371 = vmatprep.mubr.f32.mxu1 %v85_v48  ;;  %v155_v63 = vld [vmem:[#allocation2 + $0x228] sm:$0xff]  ;;  %v125_v16 = vld [vmem:[#allocation2 + $0x138] sm:$0xff]  ;;  %v1006_v17 = vpack.c.bf16 %v154_v8, %v150_v7  ;;  %v158_v19 = vld [vmem:[#allocation2 + $0x240] sm:$0xff] }
  0x5d   :  { %v1004_v6 = vpack.c.bf16 %v155_v63, %v151_v60  ;;  %v159_v9 = vld [vmem:[#allocation2 + $0x248] sm:$0xff]  ;;  %v162_v20 = vld [vmem:[#allocation2 + $0x260] sm:$0xff]  ;;  %1049 = vmatprep.subr.bf16.mxu1 %v1048_v12  ;;  %v1052_v24 = vpack.c.bf16 %v125_v16, %v121_v15  ;;  %v120_v25 = vld [vmem:[#allocation2 + $0x110] sm:$0xff] }
  0x5e   :  { %v163_v11 = vld [vmem:[#allocation2 + $0x268] sm:$0xff]  ;;  %v124_v26 = vld [vmem:[#allocation2 + $0x130] sm:$0xff]  ;;  %v129_v27 = vld [vmem:[#allocation2 + $0x158] sm:$0xff]  ;;  %v1010_v29 = vpack.c.bf16 %v162_v20, %v158_v19  ;;  %1051 = vmatpush1.bf16.msra.mxu1 %v1050_v22 }
  0x5f   :  { %991 = vmatpush1.bf16.msra.mxu0 %v990_v31  ;;  %v1008_v18 = vpack.c.bf16 %v163_v11, %v159_v9  ;;  %v167_v21 = vld [vmem:[#allocation2 + $0x288] sm:$0xff]  ;;  %v133_v28 = vld [vmem:[#allocation2 + $0x178] sm:$0xff]  ;;  %v166_v31 = vld [vmem:[#allocation2 + $0x280] sm:$0xff]  ;;  %v1054_v34 = vpack.c.bf16 %v124_v26, %v120_v25  ;;  %1053 = vmatprep.subr.bf16.mxu1 %v1052_v24 }
  0x60   :  { %993 = vmatprep.subr.bf16.mxu0 %v992_v32  ;;  %v171_v23 = vld [vmem:[#allocation2 + $0x2a8] sm:$0xff]  ;;  %v170_v32 = vld [vmem:[#allocation2 + $0x2a0] sm:$0xff]  ;;  %v1056_v36 = vpack.c.bf16 %v133_v28, %v129_v27  ;;  %v132_v38 = vld [vmem:[#allocation2 + $0x170] sm:$0xff] }
  0x61   :  { %v1012_v30 = vpack.c.bf16 %v171_v23, %v167_v21  ;;  %v175_v33 = vld [vmem:[#allocation2 + $0x2c8] sm:$0xff]  ;;  %v137_v39 = vld [vmem:[#allocation2 + $0x198] sm:$0xff]  ;;  %v174_v43 = vld [vmem:[#allocation2 + $0x2c0] sm:$0xff] }
  0x62   :  { %v179_v35 = vld [vmem:[#allocation2 + $0x2e8] sm:$0xff]  ;;  %v141_v40 = vld [vmem:[#allocation2 + $0x1b8] sm:$0xff]  ;;  %v178_v44 = vld [vmem:[#allocation2 + $0x2e0] sm:$0xff]  ;;  %1055 = vmatpush1.bf16.msra.mxu1 %v1054_v34 }
  0x63   :  { %995 = vmatpush1.bf16.msra.mxu0 %v994_v37  ;;  %v128_v37 = vld [vmem:[#allocation2 + $0x150] sm:$0xff]  ;;  %v1016_v42 = vpack.c.bf16 %v179_v35, %v175_v33  ;;  %v183_v45 = vld [vmem:[#allocation2 + $0x308] sm:$0xff]  ;;  %1057 = vmatprep.subr.bf16.mxu1 %v1056_v36  ;;  %v1060_v48 = vpack.c.bf16 %v141_v40, %v137_v39  ;;  %v145_v51 = vld [vmem:[#allocation2 + $0x1d8] sm:$0xff] }
  0x64   :  { %997 = vmatprep.subr.bf16.mxu0 %v996_v41  ;;  %v1014_v41 = vpack.c.bf16 %v170_v32, %v166_v31  ;;  %v1058_v46 = vpack.c.bf16 %v132_v38, %v128_v37  ;;  %v187_v47 = vld [vmem:[#allocation2 + $0x328] sm:$0xff]  ;;  %v136_v49 = vld [vmem:[#allocation2 + $0x190] sm:$0xff]  ;;  %v149_v52 = vld [vmem:[#allocation2 + $0x1f8] sm:$0xff] }
  0x65   :  { %v140_v50 = vld [vmem:[#allocation2 + $0x1b0] sm:$0xff]  ;;  %v1020_v54 = vpack.c.bf16 %v187_v47, %v183_v45  ;;  %v182_v55 = vld [vmem:[#allocation2 + $0x300] sm:$0xff]  ;;  %v191_v57 = vld [vmem:[#allocation2 + $0x348] sm:$0xff]  ;;  %v1064_v60 = vpack.c.bf16 %v149_v52, %v145_v51 }
  0x66   :  { %v186_v56 = vld [vmem:[#allocation2 + $0x320] sm:$0xff]  ;;  %1059 = vmatpush1.bf16.msra.mxu1 %v1058_v46  ;;  %v195_v59 = vld [vmem:[#allocation2 + $0x368] sm:$0xff]  ;;  %v144_v61 = vld [vmem:[#allocation2 + $0x1d0] sm:$0xff] }
  0x67   :  { %999 = vmatpush1.bf16.msra.mxu0 %v998_v53  ;;  %v1018_v53 = vpack.c.bf16 %v178_v44, %v174_v43  ;;  %1061 = vmatprep.subr.bf16.mxu1 %v1060_v48  ;;  %v148_v62 = vld [vmem:[#allocation2 + $0x1f0] sm:$0xff]  ;;  %v153_v63 = vld [vmem:[#allocation2 + $0x218] sm:$0xff]  ;;  %v1022_v1 = vpack.c.bf16 %v186_v56, %v182_v55  ;;  %v1024_v2 = vpack.c.bf16 %v195_v59, %v191_v57  ;;  %v190_v3 = vld [vmem:[#allocation2 + $0x340] sm:$0xff] }
  0x68   :  { %1001 = vmatprep.subr.bf16.mxu0 %v1000_v58  ;;  %v1062_v58 = vpack.c.bf16 %v140_v50, %v136_v49  ;;  %v157_v0 = vld [vmem:[#allocation2 + $0x238] sm:$0xff]  ;;  %v194_v4 = vld [vmem:[#allocation2 + $0x360] sm:$0xff]  ;;  %v203_v7 = vld [vmem:[#allocation2 + $0x3a8] sm:$0xff] }
  0x69   :  { %v1068_v8 = vpack.c.bf16 %v157_v0, %v153_v63  ;;  %v152_v9 = vld [vmem:[#allocation2 + $0x210] sm:$0xff]  ;;  %v161_v11 = vld [vmem:[#allocation2 + $0x258] sm:$0xff]  ;;  %v1026_v13 = vpack.c.bf16 %v194_v4, %v190_v3  ;;  %v198_v15 = vld [vmem:[#allocation2 + $0x380] sm:$0xff] }
  0x6a   :  { %1063 = vmatpush1.bf16.msra.mxu1 %v1062_v58  ;;  %v156_v10 = vld [vmem:[#allocation2 + $0x230] sm:$0xff]  ;;  %v165_v12 = vld [vmem:[#allocation2 + $0x278] sm:$0xff]  ;;  %v202_v16 = vld [vmem:[#allocation2 + $0x3a0] sm:$0xff] }
  0x6b   :  { %1003 = vmatpush1.bf16.msra.mxu0 %v1002_v5  ;;  %v199_v5 = vld [vmem:[#allocation2 + $0x388] sm:$0xff]  ;;  %1065 = vmatprep.subr.bf16.mxu1 %v1064_v60  ;;  %v1072_v20 = vpack.c.bf16 %v165_v12, %v161_v11  ;;  %v160_v21 = vld [vmem:[#allocation2 + $0x250] sm:$0xff]  ;;  %v169_v23 = vld [vmem:[#allocation2 + $0x298] sm:$0xff]  ;;  %v1030_v25 = vpack.c.bf16 %v202_v16, %v198_v15 }
  0x6c   :  { %1005 = vmatprep.subr.bf16.mxu0 %v1004_v6  ;;  %v1066_v6 = vpack.c.bf16 %v148_v62, %v144_v61  ;;  %v1028_v14 = vpack.c.bf16 %v203_v7, %v199_v5  ;;  %v211_v19 = vld [vmem:[#allocation2 + $0x3e8] sm:$0xff]  ;;  %v164_v22 = vld [vmem:[#allocation2 + $0x270] sm:$0xff]  ;;  %v173_v24 = vld [vmem:[#allocation2 + $0x2b8] sm:$0xff] }
  0x6d   :  { %v206_v27 = vld [vmem:[#allocation2 + $0x3c0] sm:$0xff]  ;;  %v1076_v31 = vpack.c.bf16 %v173_v24, %v169_v23  ;;  %v172_v32 = vld [vmem:[#allocation2 + $0x2b0] sm:$0xff]  ;;  %v391_v33 = vld [vmem:[#allocation4 + $0x8] sm:$0xff] }
  0x6e   :  { %1067 = vmatpush1.bf16.msra.mxu1 %v1066_v6  ;;  %v210_v28 = vld [vmem:[#allocation2 + $0x3e0] sm:$0xff]  ;;  %v393_v34 = vld [vmem:[#allocation4 + $0x18] sm:$0xff]  ;;  %v176_v39 = vld [vmem:[#allocation2 + $0x2d0] sm:$0xff] }
  0x6f   :  { %1007 = vmatpush1.bf16.msra.mxu0 %v1006_v17  ;;  %v207_v17 = vld [vmem:[#allocation2 + $0x3c8] sm:$0xff]  ;;  %1069 = vmatprep.subr.bf16.mxu1 %v1068_v8  ;;  %v177_v35 = vld [vmem:[#allocation2 + $0x2d8] sm:$0xff]  ;;  %v1034_v37 = vpack.c.bf16 %v210_v28, %v206_v27  ;;  %v1100_v40 = vpack.c.bf16 %v393_v34, %v391_v33  ;;  %v180_v44 = vld [vmem:[#allocation2 + $0x2f0] sm:$0xff] }
  0x70   :  { %1009 = vmatprep.subr.bf16.mxu0 %v1008_v18  ;;  %v1070_v18 = vpack.c.bf16 %v156_v10, %v152_v9  ;;  %v1032_v26 = vpack.c.bf16 %v211_v19, %v207_v17  ;;  %v181_v36 = vld [vmem:[#allocation2 + $0x2f8] sm:$0xff]  ;;  %v395_v45 = vld [vmem:[#allocation4 + $0x28] sm:$0xff]  ;;  %v1507_v49 = vld [vmem:[%s1546_s0] sm:$0xff]  ;;  %v1082_v51 = vpack.c.bf16 %v180_v44, %v176_v39 }
  0x71   :  { %v1080_v43 = vpack.c.bf16 %v181_v36, %v177_v35  ;;  %v397_v46 = vld [vmem:[#allocation4 + $0x38] sm:$0xff]  ;;  %v184_v52 = vld [vmem:[#allocation2 + $0x310] sm:$0xff]  ;;  %v399_v58 = vld [vmem:[#allocation4 + $0x48] sm:$0xff] }
  0x72   :  { %1071 = vmatpush1.bf16.msra.mxu1 %v1070_v18  ;;  %v185_v47 = vld [vmem:[#allocation2 + $0x318] sm:$0xff]  ;;  %v396_v55 = vld [vmem:[#allocation4 + $0x30] sm:$0xff]  ;;  %v403_v6 = vld [vmem:[#allocation4 + $0x68] sm:$0xff] }
  0x73   :  { %1011 = vmatpush1.bf16.msra.mxu0 %v1010_v29  ;;  %v1074_v29 = vpack.c.bf16 %v164_v22, %v160_v21  ;;  %1073 = vmatprep.subr.bf16.mxu1 %v1072_v20  ;;  %v189_v48 = vld [vmem:[#allocation2 + $0x338] sm:$0xff]  ;;  %v188_v57 = vld [vmem:[#allocation2 + $0x330] sm:$0xff]  ;;  %v407_v18 = vld [vmem:[#allocation4 + $0x88] sm:$0xff] }
  0x74   :  { %1013 = vmatprep.subr.bf16.mxu0 %v1012_v30  ;;  %v168_v30 = vld [vmem:[#allocation2 + $0x290] sm:$0xff]  ;;  %v1084_v56 = vpack.c.bf16 %v189_v48, %v185_v47  ;;  %v401_v59 = vld [vmem:[#allocation4 + $0x58] sm:$0xff]  ;;  %v1086_v63 = vpack.c.bf16 %v188_v57, %v184_v52  ;;  %v410_v35 = vld [vmem:[#allocation4 + $0xa0] sm:$0xff] }
  0x75   :  { %v1078_v38 = vpack.c.bf16 %v172_v32, %v168_v30  ;;  %v193_v60 = vld [vmem:[#allocation2 + $0x358] sm:$0xff]  ;;  %v192_v0 = vld [vmem:[#allocation2 + $0x350] sm:$0xff]  ;;  %v411_v30 = vld [vmem:[#allocation4 + $0xa8] sm:$0xff] }
  0x76   :  { %1075 = vmatpush1.bf16.msra.mxu1 %v1074_v29  ;;  %v197_v61 = vld [vmem:[#allocation2 + $0x378] sm:$0xff]  ;;  %v400_v3 = vld [vmem:[#allocation4 + $0x50] sm:$0xff]  ;;  %v418_v47 = vld [vmem:[#allocation4 + $0xe0] sm:$0xff] }
  0x77   :  { %1015 = vmatpush1.bf16.msra.mxu0 %v1014_v41  ;;  %v390_v41 = vld [vmem:[#allocation4] sm:$0xff]  ;;  %1077 = vmatprep.subr.bf16.mxu1 %v1076_v31  ;;  %v1088_v4 = vpack.c.bf16 %v197_v61, %v193_v60  ;;  %v196_v5 = vld [vmem:[#allocation2 + $0x370] sm:$0xff]  ;;  %v405_v7 = vld [vmem:[#allocation4 + $0x78] sm:$0xff] }
  0x78   :  { %1017 = vmatprep.subr.bf16.mxu0 %v1016_v42  ;;  %v392_v42 = vld [vmem:[#allocation4 + $0x10] sm:$0xff]  ;;  %v201_v8 = vld [vmem:[#allocation2 + $0x398] sm:$0xff]  ;;  %v1090_v11 = vpack.c.bf16 %v196_v5, %v192_v0  ;;  %v431_v61 = vld [vmem:[#allocation4 + $0x148] sm:$0xff] }
  0x79   :  { %v1102_v50 = vpack.c.bf16 %v392_v42, %v390_v41  ;;  %v205_v9 = vld [vmem:[#allocation2 + $0x3b8] sm:$0xff]  ;;  %v200_v12 = vld [vmem:[#allocation2 + $0x390] sm:$0xff]  ;;  %v414_v41 = vld [vmem:[#allocation4 + $0xc0] sm:$0xff] }
  0x7a   :  { %1079 = vmatpush1.bf16.msra.mxu1 %v1078_v38  ;;  %v404_v15 = vld [vmem:[#allocation4 + $0x70] sm:$0xff]  ;;  %v1092_v16 = vpack.c.bf16 %v205_v9, %v201_v8  ;;  %v409_v19 = vld [vmem:[#allocation4 + $0x98] sm:$0xff]  ;;  %v439_v9 = vld [vmem:[#allocation4 + $0x188] sm:$0xff] }
  0x7b   :  { %1019 = vmatpush1.bf16.msra.mxu0 %v1018_v53  ;;  %v1104_v53 = vpack.c.bf16 %v397_v46, %v395_v45  ;;  %1081 = vmatprep.subr.bf16.mxu1 %v1080_v43  ;;  %v204_v17 = vld [vmem:[#allocation2 + $0x3b0] sm:$0xff]  ;;  %v209_v20 = vld [vmem:[#allocation2 + $0x3d8] sm:$0xff]  ;;  %v419_v43 = vld [vmem:[#allocation4 + $0xe8] sm:$0xff] }
  0x7c   :  { %1021 = vmatprep.subr.bf16.mxu0 %v1020_v54  ;;  %v394_v54 = vld [vmem:[#allocation4 + $0x20] sm:$0xff]  ;;  %v213_v21 = vld [vmem:[#allocation2 + $0x3f8] sm:$0xff]  ;;  %v1094_v23 = vpack.c.bf16 %v204_v17, %v200_v12  ;;  %v208_v24 = vld [vmem:[#allocation2 + $0x3d0] sm:$0xff] }
  0x7d   :  { %v1106_v62 = vpack.c.bf16 %v396_v55, %v394_v54  ;;  %v408_v27 = vld [vmem:[#allocation4 + $0x90] sm:$0xff]  ;;  %v1096_v28 = vpack.c.bf16 %v213_v21, %v209_v20  ;;  %v413_v31 = vld [vmem:[#allocation4 + $0xb8] sm:$0xff]  ;;  %v422_v54 = vld [vmem:[#allocation4 + $0x100] sm:$0xff] }
  0x7e   :  { %1083 = vmatpush1.bf16.msra.mxu1 %v1082_v51  ;;  %v212_v29 = vld [vmem:[#allocation2 + $0x3f0] sm:$0xff]  ;;  %v1120_v34 = vpack.c.bf16 %v413_v31, %v411_v30  ;;  %v417_v38 = vld [vmem:[#allocation4 + $0xd8] sm:$0xff]  ;;  %v447_v21 = vld [vmem:[#allocation4 + $0x1c8] sm:$0xff] }
  0x7f   :  { %1023 = vmatpush1.bf16.msra.mxu0 %v1022_v1  ;;  %v1108_v1 = vpack.c.bf16 %v401_v59, %v399_v58  ;;  %1085 = vmatprep.subr.bf16.mxu1 %v1084_v56  ;;  %v1098_v33 = vpack.c.bf16 %v212_v29, %v208_v24  ;;  %v412_v36 = vld [vmem:[#allocation4 + $0xb0] sm:$0xff]  ;;  %v421_v44 = vld [vmem:[#allocation4 + $0xf8] sm:$0xff]  ;;  %v427_v56 = vld [vmem:[#allocation4 + $0x128] sm:$0xff] }
  0x80   :  { %1025 = vmatprep.subr.bf16.mxu0 %v1024_v2  ;;  %v398_v2 = vld [vmem:[#allocation4 + $0x40] sm:$0xff]  ;;  %v1122_v39 = vpack.c.bf16 %v412_v36, %v410_v35  ;;  %v416_v42 = vld [vmem:[#allocation4 + $0xd0] sm:$0xff]  ;;  %v1128_v46 = vpack.c.bf16 %v421_v44, %v419_v43  ;;  %v425_v51 = vld [vmem:[#allocation4 + $0x118] sm:$0xff] }
  0x81   :  { %v1110_v10 = vpack.c.bf16 %v400_v3, %v398_v2  ;;  %v1126_v45 = vpack.c.bf16 %v416_v42, %v414_v41  ;;  %v420_v48 = vld [vmem:[#allocation4 + $0xf0] sm:$0xff]  ;;  %v429_v57 = vld [vmem:[#allocation4 + $0x138] sm:$0xff]  ;;  %v426_v59 = vld [vmem:[#allocation4 + $0x120] sm:$0xff] }
  0x82   :  { %1087 = vmatpush1.bf16.msra.mxu1 %v1086_v63  ;;  %v1130_v52 = vpack.c.bf16 %v420_v48, %v418_v47  ;;  %v424_v55 = vld [vmem:[#allocation4 + $0x110] sm:$0xff]  ;;  %v435_v3 = vld [vmem:[#allocation4 + $0x168] sm:$0xff]  ;;  %v453_v29 = vld [vmem:[#allocation4 + $0x1f8] sm:$0xff] }
  0x83   :  { %1027 = vmatpush1.bf16.msra.mxu0 %v1026_v13  ;;  %v1112_v13 = vpack.c.bf16 %v405_v7, %v403_v6  ;;  %1089 = vmatprep.subr.bf16.mxu1 %v1088_v4  ;;  %v1134_v58 = vpack.c.bf16 %v424_v55, %v422_v54  ;;  %v428_v60 = vld [vmem:[#allocation4 + $0x130] sm:$0xff]  ;;  %v437_v4 = vld [vmem:[#allocation4 + $0x178] sm:$0xff]  ;;  %v434_v7 = vld [vmem:[#allocation4 + $0x160] sm:$0xff] }
  0x84   :  { %1029 = vmatprep.subr.bf16.mxu0 %v1028_v14  ;;  %v402_v14 = vld [vmem:[#allocation4 + $0x60] sm:$0xff]  ;;  %v1138_v63 = vpack.c.bf16 %v428_v60, %v426_v59  ;;  %v432_v2 = vld [vmem:[#allocation4 + $0x150] sm:$0xff]  ;;  %v1144_v6 = vpack.c.bf16 %v437_v4, %v435_v3  ;;  %v457_v35 = vld [vmem:[#allocation4 + $0x218] sm:$0xff] }
  0x85   :  { %v1114_v22 = vpack.c.bf16 %v404_v15, %v402_v14  ;;  %v436_v8 = vld [vmem:[#allocation4 + $0x170] sm:$0xff]  ;;  %v443_v15 = vld [vmem:[#allocation4 + $0x1a8] sm:$0xff]  ;;  %v450_v31 = vld [vmem:[#allocation4 + $0x1e0] sm:$0xff] }
  0x86   :  { %1091 = vmatpush1.bf16.msra.mxu1 %v1090_v11  ;;  %v1146_v11 = vpack.c.bf16 %v436_v8, %v434_v7  ;;  %v440_v14 = vld [vmem:[#allocation4 + $0x190] sm:$0xff]  ;;  %v679_v41 = vld [vmem:[#allocation6 + $0x8] sm:$0xff]  ;;  %v697_v43 = vld [vmem:[#allocation6 + $0x98] sm:$0xff] }
  0x87   :  { %1031 = vmatpush1.bf16.msra.mxu0 %v1030_v25  ;;  %v1116_v25 = vpack.c.bf16 %v409_v19, %v407_v18  ;;  %1093 = vmatprep.subr.bf16.mxu1 %v1092_v16  ;;  %v445_v16 = vld [vmem:[#allocation4 + $0x1b8] sm:$0xff]  ;;  %v442_v19 = vld [vmem:[#allocation4 + $0x1a0] sm:$0xff]  ;;  %v444_v20 = vld [vmem:[#allocation4 + $0x1b0] sm:$0xff] }
  0x88   :  { %1033 = vmatprep.subr.bf16.mxu0 %v1032_v26  ;;  %v406_v26 = vld [vmem:[#allocation4 + $0x80] sm:$0xff]  ;;  %v1152_v18 = vpack.c.bf16 %v445_v16, %v443_v15  ;;  %v696_v42 = vld [vmem:[#allocation6 + $0x90] sm:$0xff]  ;;  %v681_v47 = vld [vmem:[#allocation6 + $0x18] sm:$0xff] }
  0x89   :  { %v1118_v32 = vpack.c.bf16 %v408_v27, %v406_v26  ;;  %v448_v26 = vld [vmem:[#allocation4 + $0x1d0] sm:$0xff]  ;;  %v698_v48 = vld [vmem:[#allocation6 + $0xa0] sm:$0xff]  ;;  %v683_v54 = vld [vmem:[#allocation6 + $0x28] sm:$0xff] }
  0x8a   :  { %1095 = vmatpush1.bf16.msra.mxu1 %v1094_v23  ;;  %v1154_v23 = vpack.c.bf16 %v444_v20, %v442_v19  ;;  %v700_v55 = vld [vmem:[#allocation6 + $0xb0] sm:$0xff]  ;;  %v685_v59 = vld [vmem:[#allocation6 + $0x38] sm:$0xff]  ;;  %v702_v60 = vld [vmem:[#allocation6 + $0xc0] sm:$0xff] }
  0x8b   :  { %1035 = vmatpush1.bf16.msra.mxu0 %v1034_v37  ;;  %1097 = vmatprep.subr.bf16.mxu1 %v1096_v28  ;;  %v415_v37 = vld [vmem:[#allocation4 + $0xc8] sm:$0xff]  ;;  %v705_v3 = vld [vmem:[#allocation6 + $0xd8] sm:$0xff]  ;;  %v454_v20 = vld [vmem:[#allocation4 + $0x200] sm:$0xff] }
  0x8c   :  { %1101 = vmatprep.subr.bf16.mxu0 %v1100_v40  ;;  %v1124_v40 = vpack.c.bf16 %v417_v38, %v415_v37  ;;  %v451_v28 = vld [vmem:[#allocation4 + $0x1e8] sm:$0xff]  ;;  %v694_v37 = vld [vmem:[#allocation6 + $0x80] sm:$0xff]  ;;  %v689_v7 = vld [vmem:[#allocation6 + $0x58] sm:$0xff] }
  0x8d   :  { %v1160_v30 = vpack.c.bf16 %v453_v29, %v451_v28  ;;  %v695_v38 = vld [vmem:[#allocation6 + $0x88] sm:$0xff]  ;;  %v458_v29 = vld [vmem:[#allocation4 + $0x220] sm:$0xff] }
  0x8e   :  { %301 = vmatmul.mubr.f32.vlgmr.msra.gmra.mrb[0].mxu0 %v1507_v49  ;;  %1099 = vmatpush1.bf16.msra.mxu1 %v1098_v33 }
  0x8f   :  { %1103 = vmatpush1.bf16.msra.mxu0 %v1102_v50  ;;  %v423_v50 = vld [vmem:[#allocation4 + $0x108] sm:$0xff] }
  0x90   :  { %1105 = vmatprep.subr.bf16.mxu0 %v1104_v53  ;;  %v1132_v53 = vpack.c.bf16 %v425_v51, %v423_v50  ;;  %v699_v50 = vld [vmem:[#allocation6 + $0xa8] sm:$0xff] }
  0x91   :  { %372 = vmatmul.mubr.f32.vlgmr.msra.gmra.mrb[0].mxu1 %v1507_v49  ;;  %v1136_v49 = vpack.c.bf16 %v429_v57, %v427_v56  ;;  %v701_v56 = vld [vmem:[#allocation6 + $0xb8] sm:$0xff] }
  0x93   :  { %1107 = vmatpush1.bf16.msra.mxu0 %v1106_v62  ;;  %v433_v62 = vld [vmem:[#allocation4 + $0x158] sm:$0xff] }
  0x94   :  { %1109 = vmatprep.subr.bf16.mxu0 %v1108_v1  ;;  %v1140_v0 = vpack.c.bf16 %v433_v62, %v431_v61  ;;  %v430_v1 = vld [vmem:[#allocation4 + $0x140] sm:$0xff]  ;;  %v703_v61 = vld [vmem:[#allocation6 + $0xc8] sm:$0xff] }
  0x95   :  { %v1142_v5 = vpack.c.bf16 %v432_v2, %v430_v1  ;;  %v687_v1 = vld [vmem:[#allocation6 + $0x48] sm:$0xff]  ;;  %v704_v2 = vld [vmem:[#allocation6 + $0xd0] sm:$0xff] }
  0x97   :  { %1111 = vmatpush1.bf16.msra.mxu0 %v1110_v10  ;;  %v441_v10 = vld [vmem:[#allocation4 + $0x198] sm:$0xff] }
  0x98   :  { %1113 = vmatprep.subr.bf16.mxu0 %v1112_v13  ;;  %v1148_v12 = vpack.c.bf16 %v441_v10, %v439_v9  ;;  %v438_v13 = vld [vmem:[#allocation4 + $0x180] sm:$0xff]  ;;  %v216_v9 = vlaneseq }
  0x99   :  { %v1150_v17 = vpack.c.bf16 %v440_v14, %v438_v13 }
  0x9a   :  { %v1511_v10 = vshrl.u32 %v216_v9, 7  ;;  %v482_v9 = vld [vmem:[#allocation4 + $0x2e0] sm:$0xff] }
  0x9b   :  { %1115 = vmatpush1.bf16.msra.mxu0 %v1114_v22  ;;  %v449_v22 = vld [vmem:[#allocation4 + $0x1d8] sm:$0xff] }
  0x9c   :  { %1117 = vmatprep.subr.bf16.mxu0 %v1116_v25  ;;  %v1156_v24 = vpack.c.bf16 %v449_v22, %v447_v21  ;;  %v446_v25 = vld [vmem:[#allocation4 + $0x1c0] sm:$0xff]  ;;  %v222_v13 = vsub.s32 1, %v1511_v10  ;;  %v456_v21 = vld [vmem:[#allocation4 + $0x210] sm:$0xff] }
  0x9d   :  { %v1158_v27 = vpack.c.bf16 %v448_v26, %v446_v25  ;;  %v1166_v26 = vpack.c.bf16 %v456_v21, %v454_v20  ;;  %v488_v20 = vld [vmem:[#allocation4 + $0x310] sm:$0xff]  ;;  %v491_v21 = vld [vmem:[#allocation4 + $0x328] sm:$0xff] }
  0x9f   :  { %1119 = vmatpush1.bf16.msra.mxu0 %v1118_v32  ;;  %v452_v32 = vld [vmem:[#allocation4 + $0x1f0] sm:$0xff] }
  0xa0   :  { %1121 = vmatprep.subr.bf16.mxu0 %v1120_v34  ;;  %v1162_v33 = vpack.c.bf16 %v452_v32, %v450_v31  ;;  %v455_v34 = vld [vmem:[#allocation4 + $0x208] sm:$0xff] }
  0xa1   :  { %v1164_v36 = vpack.c.bf16 %v457_v35, %v455_v34  ;;  %v463_v32 = vld [vmem:[#allocation4 + $0x248] sm:$0xff] }
  0xa3   :  { %1123 = vmatpush1.bf16.msra.mxu0 %v1122_v39  ;;  %v678_v39 = vld [vmem:[#allocation6] sm:$0xff] }
  0xa4   :  { %1125 = vmatprep.subr.bf16.mxu0 %v1124_v40  ;;  %v1228_v40 = vpack.c.bf16 %v695_v38, %v694_v37  ;;  %v1230_v44 = vpack.c.bf16 %v679_v41, %v678_v39  ;;  %v464_v37 = vld [vmem:[#allocation4 + $0x250] sm:$0xff]  ;;  %v467_v38 = vld [vmem:[#allocation4 + $0x268] sm:$0xff]  ;;  %v469_v39 = vld [vmem:[#allocation4 + $0x278] sm:$0xff] }
  0xa5   :  { %v1176_v41 = vpack.c.bf16 %v469_v39, %v467_v38  ;;  %v500_v38 = vld [vmem:[#allocation4 + $0x370] sm:$0xff]  ;;  %v503_v39 = vld [vmem:[#allocation4 + $0x388] sm:$0xff] }
  0xa6   :  { %1229 = vmatprep.subr.bf16.mxu1 %v1228_v40 }
  0xa7   :  { %1127 = vmatpush1.bf16.msra.mxu0 %v1126_v45  ;;  %v1232_v45 = vpack.c.bf16 %v697_v43, %v696_v42  ;;  %1231 = vmatpush3.bf16.msra.mxu1 %v1230_v44  ;;  %v466_v42 = vld [vmem:[#allocation4 + $0x260] sm:$0xff]  ;;  %v468_v43 = vld [vmem:[#allocation4 + $0x270] sm:$0xff]  ;;  %v471_v44 = vld [vmem:[#allocation4 + $0x288] sm:$0xff] }
  0xa8   :  { %1129 = vmatprep.subr.bf16.mxu0 %v1128_v46  ;;  %v680_v46 = vld [vmem:[#allocation6 + $0x10] sm:$0xff] }
  0xa9   :  { %v1234_v51 = vpack.c.bf16 %v681_v47, %v680_v46  ;;  %1233 = vmatprep.subr.bf16.mxu1 %v1232_v45  ;;  %v473_v45 = vld [vmem:[#allocation4 + $0x298] sm:$0xff]  ;;  %v230_v46 = vsub.s32 3, %v1511_v10  ;;  %v1178_v47 = vpack.c.bf16 %v468_v43, %v466_v42  ;;  %v502_v43 = vld [vmem:[#allocation4 + $0x380] sm:$0xff] }
  0xab   :  { %1131 = vmatpush1.bf16.msra.mxu0 %v1130_v52  ;;  %v1236_v52 = vpack.c.bf16 %v699_v50, %v698_v48  ;;  %1235 = vmatpush3.bf16.msra.mxu1 %v1234_v51  ;;  %v1180_v48 = vpack.c.bf16 %v473_v45, %v471_v44  ;;  %v470_v50 = vld [vmem:[#allocation4 + $0x280] sm:$0xff]  ;;  %v472_v51 = vld [vmem:[#allocation4 + $0x290] sm:$0xff]  ;;  %v507_v45 = vld [vmem:[#allocation4 + $0x3a8] sm:$0xff] }
  0xac   :  { %1133 = vmatprep.subr.bf16.mxu0 %v1132_v53  ;;  %v682_v53 = vld [vmem:[#allocation6 + $0x20] sm:$0xff]  ;;  %v504_v44 = vld [vmem:[#allocation4 + $0x390] sm:$0xff] }
  0xad   :  { %v1238_v57 = vpack.c.bf16 %v683_v54, %v682_v53  ;;  %1237 = vmatprep.subr.bf16.mxu1 %v1236_v52  ;;  %v475_v52 = vld [vmem:[#allocation4 + $0x2a8] sm:$0xff]  ;;  %v477_v53 = vld [vmem:[#allocation4 + $0x2b8] sm:$0xff] }
  0xaf   :  { %1135 = vmatpush1.bf16.msra.mxu0 %v1134_v58  ;;  %v1240_v58 = vpack.c.bf16 %v701_v56, %v700_v55  ;;  %1239 = vmatpush3.bf16.msra.mxu1 %v1238_v57  ;;  %v1182_v55 = vpack.c.bf16 %v472_v51, %v470_v50  ;;  %v1184_v57 = vpack.c.bf16 %v477_v53, %v475_v52  ;;  %v506_v50 = vld [vmem:[#allocation4 + $0x3a0] sm:$0xff]  ;;  %v508_v51 = vld [vmem:[#allocation4 + $0x3b0] sm:$0xff]  ;;  %v226_v52 = vsub.s32 2, %v1511_v10  ;;  %v511_v53 = vld [vmem:[#allocation4 + $0x3c8] sm:$0xff] }
  0xb0   :  { %1137 = vmatprep.subr.bf16.mxu0 %v1136_v49  ;;  %v684_v49 = vld [vmem:[#allocation6 + $0x30] sm:$0xff] }
  0xb1   :  { %v1242_v62 = vpack.c.bf16 %v685_v59, %v684_v49  ;;  %1241 = vmatprep.subr.bf16.mxu1 %v1240_v58  ;;  %v474_v58 = vld [vmem:[#allocation4 + $0x2a0] sm:$0xff]  ;;  %v476_v49 = vld [vmem:[#allocation4 + $0x2b0] sm:$0xff] }
  0xb3   :  { %1139 = vmatpush1.bf16.msra.mxu0 %v1138_v63  ;;  %v1244_v63 = vpack.c.bf16 %v703_v61, %v702_v60  ;;  %1243 = vmatpush3.bf16.msra.mxu1 %v1242_v62  ;;  %v479_v60 = vld [vmem:[#allocation4 + $0x2c8] sm:$0xff]  ;;  %v481_v61 = vld [vmem:[#allocation4 + $0x2d8] sm:$0xff] }
  0xb4   :  { %1141 = vmatprep.subr.bf16.mxu0 %v1140_v0  ;;  %v686_v0 = vld [vmem:[#allocation6 + $0x40] sm:$0xff] }
  0xb5   :  { %v1246_v4 = vpack.c.bf16 %v687_v1, %v686_v0  ;;  %1245 = vmatprep.subr.bf16.mxu1 %v1244_v63  ;;  %v1186_v63 = vpack.c.bf16 %v476_v49, %v474_v58  ;;  %v1188_v1 = vpack.c.bf16 %v481_v61, %v479_v60  ;;  %v510_v58 = vld [vmem:[#allocation4 + $0x3c0] sm:$0xff]  ;;  %v512_v49 = vld [vmem:[#allocation4 + $0x3d0] sm:$0xff]  ;;  %v515_v60 = vld [vmem:[#allocation4 + $0x3e8] sm:$0xff] }
  0xb6   :  { %v517_v61 = vld [vmem:[#allocation4 + $0x3f8] sm:$0xff] }
  0xb7   :  { %1143 = vmatpush1.bf16.msra.mxu0 %v1142_v5  ;;  %v1248_v5 = vpack.c.bf16 %v705_v3, %v704_v2  ;;  %1247 = vmatpush3.bf16.msra.mxu1 %v1246_v4  ;;  %v478_v2 = vld [vmem:[#allocation4 + $0x2c0] sm:$0xff]  ;;  %v480_v3 = vld [vmem:[#allocation4 + $0x2d0] sm:$0xff]  ;;  %v483_v4 = vld [vmem:[#allocation4 + $0x2e8] sm:$0xff] }
  0xb8   :  { %1145 = vmatprep.subr.bf16.mxu0 %v1144_v6  ;;  %v688_v6 = vld [vmem:[#allocation6 + $0x50] sm:$0xff] }
  0xb9   :  { %v1250_v8 = vpack.c.bf16 %v689_v7, %v688_v6  ;;  %1249 = vmatprep.subr.bf16.mxu1 %v1248_v5  ;;  %v485_v5 = vld [vmem:[#allocation4 + $0x2f8] sm:$0xff]  ;;  %v1190_v7 = vpack.c.bf16 %v480_v3, %v478_v2 }
  0xbb   :  { %1147 = vmatpush1.bf16.msra.mxu0 %v1146_v11  ;;  %1251 = vmatpush3.bf16.msra.mxu1 %v1250_v8  ;;  %v218_v11 = vsub.s32 0, %v1511_v10  ;;  %v1192_v8 = vpack.c.bf16 %v485_v5, %v483_v4 }
  0xbc   :  { %1149 = vmatprep.subr.bf16.mxu0 %v1148_v12  ;;  %v1517_v12 = vld [vmem:[%s1548_s2] sm:$0xf] }
  0xbd   :  { %v219_v14 = vrot.slane %v1517_v12, %v218_v11  ;;  %v223_v15 = vrot.slane %v1517_v12, %v222_v13  ;;  %v231_v54 = vrot.slane %v1517_v12, %v230_v46  ;;  %v509_v46 = vld [vmem:[#allocation4 + $0x3b8] sm:$0xff] }
  0xbf   :  { %1151 = vmatpush1.bf16.msra.mxu0 %v1150_v17 }
  0xc0   :  { %1153 = vmatprep.subr.bf16.mxu0 %v1152_v18 }
  0xc3   :  { %1155 = vmatpush1.bf16.msra.mxu0 %v1154_v23  ;;  %v459_v23 = vld [vmem:[#allocation4 + $0x228] sm:$0xff] }
  0xc4   :  { %1157 = vmatprep.subr.bf16.mxu0 %v1156_v24  ;;  %v461_v24 = vld [vmem:[#allocation4 + $0x238] sm:$0xff] }
  0xc5   :  { %v1168_v28 = vpack.c.bf16 %v461_v24, %v459_v23 }
  0xc7   :  { %1159 = vmatpush1.bf16.msra.mxu0 %v1158_v27 }
  0xc8   :  { %1161 = vmatprep.subr.bf16.mxu0 %v1160_v30  ;;  %v460_v30 = vld [vmem:[#allocation4 + $0x230] sm:$0xff] }
  0xc9   :  { %v1170_v34 = vpack.c.bf16 %v460_v30, %v458_v29 }
  0xcb   :  { %1163 = vmatpush1.bf16.msra.mxu0 %v1162_v33  ;;  %v465_v33 = vld [vmem:[#allocation4 + $0x258] sm:$0xff] }
  0xcc   :  { %1165 = vmatprep.subr.bf16.mxu0 %v1164_v36  ;;  %v1172_v35 = vpack.c.bf16 %v465_v33, %v463_v32  ;;  %v462_v36 = vld [vmem:[#allocation4 + $0x240] sm:$0xff]  ;;  %v496_v32 = vld [vmem:[#allocation4 + $0x350] sm:$0xff]  ;;  %v499_v33 = vld [vmem:[#allocation4 + $0x368] sm:$0xff] }
  0xcd   :  { %v1174_v40 = vpack.c.bf16 %v464_v37, %v462_v36  ;;  %v498_v37 = vld [vmem:[#allocation4 + $0x360] sm:$0xff] }
 0x161   :  { %v302_v16 = vpop.f32.mrb[0].mxu0 }
 0x162   :  { %v303_v17 = vadd.f32 %v302_v16, %v219_v14  ;;  %v304_v18 = vpop.f32.mrb[1].mxu0  ;;  %v484_v14 = vld [vmem:[#allocation4 + $0x2f0] sm:$0xff]  ;;  %v489_v16 = vld [vmem:[#allocation4 + $0x318] sm:$0xff] }
 0x163   :  { %v305_v19 = vadd.f32 %v304_v18, %v223_v15  ;;  %v487_v15 = vld [vmem:[#allocation4 + $0x308] sm:$0xff] }
 0x164   :  { %v382_v22 = vmul.f32 0.01, %v303_v17  ;;  %vm378_vm0 = vcmp.ge.f32.partialorder %v303_v17, 0.0  ;;  %v1528_v56 = vpop.f32.mrb[0].mxu1  ;;  %v1196_v18 = vpack.c.bf16 %v489_v16, %v487_v15  ;;  %v708_v15 = vld [vmem:[#allocation6 + $0xf0] sm:$0xff]  ;;  %v709_v16 = vld [vmem:[#allocation6 + $0xf8] sm:$0xff] }
 0x165   :  { %v383_v25 = vmul.f32 0.01, %v305_v19  ;;  %vm379_vm1 = vcmp.ge.f32.partialorder %v305_v19, 0.0  ;;  %v375_v59 = vpop.f32.mrb[1].mxu1 }
 0x166   :  { %v386_v31 = vsel %vm378_vm0, %v303_v17, %v382_v22  ;;  %v376_v62 = vadd.f32 %v375_v59, %v231_v54  ;;  %v1194_v17 = vpack.c.bf16 %v484_v14, %v482_v9  ;;  %v493_v22 = vld [vmem:[#allocation4 + $0x338] sm:$0xff]  ;;  %v227_v59 = vrot.slane %v1517_v12, %v226_v52  ;;  %v707_v12 = vld [vmem:[#allocation6 + $0xe8] sm:$0xff] }
 0x167   :  { %v387_v27 = vsel %vm379_vm1, %v305_v19, %v383_v25  ;;  %v486_v19 = vld [vmem:[#allocation4 + $0x300] sm:$0xff]  ;;  %v1200_v24 = vpack.c.bf16 %v493_v22, %v491_v21  ;;  %v513_v54 = vld [vmem:[#allocation4 + $0x3d8] sm:$0xff]  ;;  %v691_v9 = vld [vmem:[#allocation6 + $0x68] sm:$0xff] }
 0x168   :  { %594 = vmatprep.mubr.f32.mxu0 %v387_v27  ;;  %v385_v0 = vmul.f32 0.01, %v376_v62  ;;  %vm381_vm2 = vcmp.ge.f32.partialorder %v376_v62, 0.0  ;;  %v1198_v23 = vpack.c.bf16 %v488_v20, %v486_v19  ;;  %v490_v25 = vld [vmem:[#allocation4 + $0x320] sm:$0xff]  ;;  %v495_v27 = vld [vmem:[#allocation4 + $0x348] sm:$0xff]  ;;  %v374_v2 = vadd.f32 %v1528_v56, %v227_v59  ;;  %v692_v56 = vld [vmem:[#allocation6 + $0x70] sm:$0xff] }
 0x169   :  { %595 = vmatmul.mubr.f32.vlgmr.msra.gmra.mrb[2].mxu0 %v386_v31  ;;  %v494_v31 = vld [vmem:[#allocation4 + $0x340] sm:$0xff]  ;;  %v1405_v20 = vmov 0.0|0.0   ;;  %v805_v52 = vld [vmem:[#allocation7 + $0x78] sm:$0xff] }
 0x16a   :  { %1167 = vmatpush1.bf16.msra.mxu0 %v1166_v26  ;;  %v389_v6 = vsel %vm381_vm2, %v376_v62, %v385_v0  ;;  %v492_v26 = vld [vmem:[#allocation4 + $0x330] sm:$0xff]  ;;  %v1222_v62 = vpack.c.bf16 %v512_v49, %v510_v58  ;;  %v514_v0 = vld [vmem:[#allocation4 + $0x3e0] sm:$0xff]  ;;  %v384_v4 = vmul.f32 0.01, %v374_v2  ;;  %vm380_vm3 = vcmp.ge.f32.partialorder %v374_v2, 0.0 }
 0x16b   :  { %1169 = vmatprep.subr.bf16.mxu0 %v1168_v28  ;;  %665 = vmatprep.mubr.f32.mxu0 %v389_v6  ;;  %v497_v28 = vld [vmem:[#allocation4 + $0x358] sm:$0xff]  ;;  %v1202_v29 = vpack.c.bf16 %v492_v26, %v490_v25  ;;  %v706_v6 = vld [vmem:[#allocation6 + $0xe0] sm:$0xff] }
 0x16c   :  { %v1204_v30 = vpack.c.bf16 %v497_v28, %v495_v27  ;;  %v388_v5 = vsel %vm380_vm3, %v374_v2, %v384_v4  ;;  %v518_v21 = vld [vmem:[%s1550_s4] sm:$0x3] }
 0x16d   :  { %v523_v22 = vrot.slane %v518_v21, %v218_v11  ;;  %v790_v28 = vld [vmem:[#allocation7] sm:$0xff] }
 0x16e   :  { %1171 = vmatpush1.bf16.msra.mxu0 %v1170_v34  ;;  %v501_v34 = vld [vmem:[#allocation4 + $0x378] sm:$0xff]  ;;  %v794_v11 = vld [vmem:[#allocation7 + $0x20] sm:$0xff] }
 0x16f   :  { %1173 = vmatprep.subr.bf16.mxu0 %v1172_v35  ;;  %v1206_v35 = vpack.c.bf16 %v496_v32, %v494_v31  ;;  %v1208_v36 = vpack.c.bf16 %v501_v34, %v499_v33  ;;  %v792_v34 = vld [vmem:[#allocation7 + $0x10] sm:$0xff] }
 0x172   :  { %1175 = vmatpush1.bf16.msra.mxu0 %v1174_v40  ;;  %v505_v40 = vld [vmem:[#allocation4 + $0x398] sm:$0xff] }
 0x173   :  { %1177 = vmatprep.subr.bf16.mxu0 %v1176_v41  ;;  %v1210_v41 = vpack.c.bf16 %v500_v38, %v498_v37  ;;  %v1212_v42 = vpack.c.bf16 %v505_v40, %v503_v39  ;;  %v796_v38 = vld [vmem:[#allocation7 + $0x30] sm:$0xff]  ;;  %v797_v39 = vld [vmem:[#allocation7 + $0x38] sm:$0xff] }
 0x174   :  { %v1270_v40 = vpack.c.bf16 %v797_v39, %v796_v38 }
 0x176   :  { %1179 = vmatpush1.bf16.msra.mxu0 %v1178_v47  ;;  %v1214_v47 = vpack.c.bf16 %v504_v44, %v502_v43  ;;  %v800_v44 = vld [vmem:[#allocation7 + $0x50] sm:$0xff] }
 0x177   :  { %1181 = vmatprep.subr.bf16.mxu0 %v1180_v48  ;;  %v1216_v48 = vpack.c.bf16 %v509_v46, %v507_v45  ;;  %v801_v45 = vld [vmem:[#allocation7 + $0x58] sm:$0xff] }
 0x178   :  { %v1276_v46 = vpack.c.bf16 %v801_v45, %v800_v44 }
 0x17a   :  { %1183 = vmatpush1.bf16.msra.mxu0 %v1182_v55  ;;  %v1218_v55 = vpack.c.bf16 %v508_v51, %v506_v50  ;;  %v804_v51 = vld [vmem:[#allocation7 + $0x70] sm:$0xff] }
 0x17b   :  { %1185 = vmatprep.subr.bf16.mxu0 %v1184_v57  ;;  %v1220_v57 = vpack.c.bf16 %v513_v54, %v511_v53  ;;  %v1282_v53 = vpack.c.bf16 %v805_v52, %v804_v51  ;;  %v1407_v54 = vmov 0.0  }
 0x17e   :  { %1187 = vmatpush1.bf16.msra.mxu0 %v1186_v63  ;;  %v1224_v63 = vpack.c.bf16 %v517_v61, %v515_v60 }
 0x17f   :  { %1189 = vmatprep.subr.bf16.mxu0 %v1188_v1  ;;  %v516_v1 = vld [vmem:[#allocation4 + $0x3f0] sm:$0xff] }
 0x180   :  { %v1226_v3 = vpack.c.bf16 %v516_v1, %v514_v0 }
 0x182   :  { %1191 = vmatpush1.bf16.msra.mxu0 %v1190_v7  ;;  %v1252_v7 = vpack.c.bf16 %v707_v12, %v706_v6 }
 0x183   :  { %1193 = vmatprep.subr.bf16.mxu0 %v1192_v8  ;;  %v690_v8 = vld [vmem:[#allocation6 + $0x60] sm:$0xff] }
 0x184   :  { %v1254_v14 = vpack.c.bf16 %v691_v9, %v690_v8  ;;  %1253 = vmatprep.subr.bf16.mxu1 %v1252_v7 }
 0x186   :  { %1195 = vmatpush1.bf16.msra.mxu0 %v1194_v17  ;;  %1255 = vmatpush3.bf16.msra.mxu1 %v1254_v14  ;;  %v1256_v17 = vpack.c.bf16 %v709_v16, %v708_v15 }
 0x187   :  { %1197 = vmatprep.subr.bf16.mxu0 %v1196_v18  ;;  %v693_v18 = vld [vmem:[#allocation6 + $0x78] sm:$0xff] }
 0x188   :  { %v1258_v19 = vpack.c.bf16 %v693_v18, %v692_v56  ;;  %1257 = vmatprep.subr.bf16.mxu1 %v1256_v17 }
 0x18a   :  { %1199 = vmatpush1.bf16.msra.mxu0 %v1198_v23  ;;  %1259 = vmatpush3.bf16.msra.mxu1 %v1258_v19  ;;  %v527_v23 = vrot.slane %v518_v21, %v222_v13  ;;  %v795_v13 = vld [vmem:[#allocation7 + $0x28] sm:$0xff] }
 0x18b   :  { %1201 = vmatprep.subr.bf16.mxu0 %v1200_v24  ;;  %1260 = vmatprep.subr.bf16.mxu1 %v1405_v20  ;;  %v1267_v37 = vpack.c.bf16 %v795_v13, %v794_v11 }
 0x18e   :  { %1203 = vmatpush1.bf16.msra.mxu0 %v1202_v29  ;;  %v791_v29 = vld [vmem:[#allocation7 + $0x8] sm:$0xff] }
 0x18f   :  { %1205 = vmatprep.subr.bf16.mxu0 %v1204_v30  ;;  %v1261_v32 = vpack.c.bf16 %v791_v29, %v790_v28 }
 0x192   :  { %1207 = vmatpush1.bf16.msra.mxu0 %v1206_v35  ;;  %v793_v35 = vld [vmem:[#allocation7 + $0x18] sm:$0xff] }
 0x193   :  { %1209 = vmatprep.subr.bf16.mxu0 %v1208_v36  ;;  %v1264_v10 = vpack.c.bf16 %v793_v35, %v792_v34 }
 0x196   :  { %1211 = vmatpush1.bf16.msra.mxu0 %v1210_v41  ;;  %v798_v41 = vld [vmem:[#allocation7 + $0x40] sm:$0xff] }
 0x197   :  { %1213 = vmatprep.subr.bf16.mxu0 %v1212_v42  ;;  %v799_v42 = vld [vmem:[#allocation7 + $0x48] sm:$0xff] }
 0x198   :  { %v1273_v43 = vpack.c.bf16 %v799_v42, %v798_v41 }
 0x19a   :  { %1215 = vmatpush1.bf16.msra.mxu0 %v1214_v47  ;;  %v802_v47 = vld [vmem:[#allocation7 + $0x60] sm:$0xff] }
 0x19b   :  { %1217 = vmatprep.subr.bf16.mxu0 %v1216_v48  ;;  %v803_v48 = vld [vmem:[#allocation7 + $0x68] sm:$0xff] }
 0x19c   :  { %v1279_v50 = vpack.c.bf16 %v803_v48, %v802_v47 }
 0x19e   :  { %1219 = vmatpush1.bf16.msra.mxu0 %v1218_v55 }
 0x19f   :  { %1221 = vmatprep.subr.bf16.mxu0 %v1220_v57  ;;  %v884_v57 = vld [vmem:[%s1552_s6] ss:$0 sm:$0xff] }
 0x1a2   :  { %1223 = vmatpush1.bf16.msra.mxu0 %v1222_v62 }
 0x1a3   :  { %1225 = vmatprep.subr.bf16.mxu0 %v1224_v63 }
 0x1a6   :  { %1227 = vmatpush1.bf16.msra.mxu0 %v1226_v3 }
 0x1a9   :  { %666 = vmatmul.mubr.f32.vlgmr.msra.gmra.mrb[2].mxu0 %v388_v5 }
 0x27c   :  { %v667_v24 = vpop.f32.mrb[2].mxu0 }
 0x27d   :  { %v1284_v25 = vadd.f32 %v667_v24, %v523_v22  ;;  %v669_v26 = vpop.f32.mrb[3].mxu0 }
 0x27e   :  { %v1285_v27 = vadd.f32 %v669_v26, %v527_v23 }
 0x27f   :  { %v674_v30 = vmul.f32 0.01, %v1284_v25  ;;  %vm672_vm4 = vcmp.ge.f32.partialorder %v1284_v25, 0.0 }
 0x280   :  { %v675_v31 = vmul.f32 0.01, %v1285_v27  ;;  %vm673_vm5 = vcmp.ge.f32.partialorder %v1285_v27, 0.0 }
 0x281   :  { %v676_v36 = vsel %vm672_vm4, %v1284_v25, %v674_v30 }
 0x282   :  { %v677_v33 = vsel %vm673_vm5, %v1285_v27, %v675_v31 }
 0x283   :  { %781 = vmatprep.mubr.f32.mxu1 %v677_v33 }
 0x284   :  { %782 = vmatmul.mubr.f32.vlgmr.msra.gmra.mrb[2].mxu1 %v676_v36 }
 0x285   :  { %1262 = vmatpush3.bf16.msra.mxu1 %v1261_v32  ;;  %969 = vmatprep.mubr.msk.f32.mxu1 %vm1406_vm6, %v1407_v54 }
 0x286   :  { %1263 = vmatprep.subr.bf16.mxu1 %v1405_v20 }
 0x289   :  { %1265 = vmatpush3.bf16.msra.mxu1 %v1264_v10 }
 0x28a   :  { %1266 = vmatprep.subr.bf16.mxu1 %v1405_v20 }
 0x28d   :  { %1268 = vmatpush3.bf16.msra.mxu1 %v1267_v37 }
 0x28e   :  { %1269 = vmatprep.subr.bf16.mxu1 %v1405_v20 }
 0x291   :  { %1271 = vmatpush3.bf16.msra.mxu1 %v1270_v40 }
 0x292   :  { %1272 = vmatprep.subr.bf16.mxu1 %v1405_v20 }
 0x295   :  { %1274 = vmatpush3.bf16.msra.mxu1 %v1273_v43 }
 0x296   :  { %1275 = vmatprep.subr.bf16.mxu1 %v1405_v20 }
 0x299   :  { %1277 = vmatpush3.bf16.msra.mxu1 %v1276_v46 }
 0x29a   :  { %1278 = vmatprep.subr.bf16.mxu1 %v1405_v20 }
 0x29d   :  { %1280 = vmatpush3.bf16.msra.mxu1 %v1279_v50 }
 0x29e   :  { %1281 = vmatprep.subr.bf16.mxu1 %v1405_v20 }
 0x2a1   :  { %1283 = vmatpush3.bf16.msra.mxu1 %v1282_v53 }
 0x357   :  { %v917_v55 = vpop.f32.mrb[2].mxu1 }
 0x358   :  { %v918_v58 = vpop.f32.mrb[3].mxu1 }
 0x359   :  { %v919_v49 = vadd.f32 %v918_v58, %v917_v55 }
 0x35b   :  { %v784_v59 = vadd.f32 %v919_v49, %v884_v57 }
 0x35d   :  { %v788_v60 = vmul.f32 0.01, %v784_v59  ;;  %vm787_vm7 = vcmp.ge.f32.partialorder %v784_v59, 0.0 }
 0x35f   :  { %v789_v61 = vsel %vm787_vm7, %v784_v59, %v788_v60 }
 0x360   :  { %970 = vmatmul.mubr.f32.vlgmr.msra.gmra.mrb[4].mxu1 %v789_v61 }
 0x433   :  { %v872_v62 = vpop.f32.mrb[4].mxu1 }
 0x434   :  { %876 = vst [vmem:[%s1554_s8] sm:$0xff] %v872_v62  ;;  %v971_v63 = vpop.f32.mrb[5].mxu1 }
 0x435   :  { %881 = vsyncpa [#allocation3], 1 }
 0x436   :  { %882 = vsyncpa [#allocation5], 1 }
 0x437   :  { %883 = vsyncpa [#allocation8], 1 }

</bundles_post_ra>
